<compile_context>
chip_gen: v7x
topology: tpu7x:2x2x1
jax: 0.10.0
libtpu: 0.0.40
codegen_flags: <defaults>
</compile_context>

<pallas_src>
import functools
import math

import jax
import jax.numpy as jnp
from jax.experimental import pallas as pl
from jax.experimental.pallas import tpu as pltpu


# --------------------------- generation-aware budgets ---------------------------


@functools.lru_cache(maxsize=None)
def _vmem_limit_bytes():
    """~75% of physical VMEM (v5e/v6e: ~96 MiB, v7x: ~48 MiB); headroom for spills."""
    cap = 128 * 1024 * 1024
    try:
        info = pltpu.get_tpu_info()
        cap = int(getattr(info, "vmem_capacity_bytes", 0)) or cap
    except Exception:
        pass
    return max(32 * 1024 * 1024, int(cap * 0.75))


def _mosaic_params(dim_sem):
    return pltpu.CompilerParams(
        dimension_semantics=dim_sem,
        vmem_limit_bytes=_vmem_limit_bytes(),
    )


_SINGLE_BUFFER_BYTES = 2 * 1024 * 1024  # weights bigger than this go single-buffered


def _weight_spec(block_shape, index_map, nbytes, grid_invariant):
    # Grid-invariant weight blocks are DMA'd once; when big, drop to a single VMEM
    # buffer (pl.Buffered(1)) so the resident copy is not doubled (critical on v7x).
    if grid_invariant and nbytes >= _SINGLE_BUFFER_BYTES:
        return pl.BlockSpec(block_shape, index_map, pipeline_mode=pl.Buffered(1))
    return pl.BlockSpec(block_shape, index_map)


def _pick_row_tile(m, vmem_limit):
    # Bigger row tiles amortize the ~0.35 us per-grid-step overhead (v5e/v6e have
    # 128 MiB VMEM to spend); keep 256 where the budget is tight (v7x).
    cap = 512 if vmem_limit >= (80 << 20) else 256
    if m <= cap:
        return m
    for t in (cap, 256, 128):
        if t <= cap and m % t == 0:
            return t
    return min(m, cap)  # ragged tail handled by pl.cdiv grid (padded rows discarded)


def _pick_col_tile(d_in, d_out, vmem_limit):
    # Keep the double-buffered bf16 (d_in, tn) weight block to ~1/4 of the budget.
    budget = vmem_limit // 4
    if 2 * d_in * d_out * 2 <= budget:
        return d_out
    for t in (2048, 1024, 512, 256, 128):
        if d_out % t == 0 and 2 * d_in * t * 2 <= budget:
            return t
    # TODO(synk): shapes where even a 128-wide weight slab does not fit would need a
    # K-tiled accumulating grid axis.
    return d_out


def _pick_seq_tile(s, cap):
    """Largest tile <= cap exactly dividing s (no padded keys enter the softmax)."""
    if s <= cap:
        return s
    for t in range(cap - cap % 128, 127, -128):  # prefer multiples of 128
        if s % t == 0:
            return t
    for t in range(cap, 0, -1):
        if s % t == 0:
            return t
    return s


def _attn_seq_tiles(s_q, s_k, d_model, n_heads, vmem_limit):
    # Budget: bf16 q/k/v/o blocks (double buffered) + f32 acc + lane-dense stats.
    budget = int(vmem_limit * 0.6)
    cap = 512
    while cap > 128:
        blocks = 4 * 2 * cap * d_model * 2        # q,k,v,o bf16, 2 pipeline buffers each
        acc = cap * d_model * 4                   # f32 accumulator (all heads)
        stats = 2 * n_heads * cap * 128 * 4       # lane-replicated m/l
        if blocks + acc + stats <= budget:
            break
        cap //= 2
    return _pick_seq_tile(s_q, cap), _pick_seq_tile(s_k, cap)


# ----------------------------- Pallas kernels ------------------------------


def _linear_kernel(x_ref, wt_ref, b_ref, o_ref):
    # x: (tm, D_in), wt: (D_in, tn) bf16 pre-transposed, b: (1, tn) f32
    x = x_ref[...].astype(jnp.bfloat16)
    y = jnp.dot(x, wt_ref[...], preferred_element_type=jnp.float32) + b_ref[...]
    o_ref[...] = y.astype(o_ref.dtype)


def _qkv_fused_kernel(x_ref, wt_ref, b_ref, oq_ref, ok_ref, ov_ref, *, d_model):
    # Self-attention path: x DMA'd ONCE, one wide (tm, D) @ (D, 3D) MXU pass,
    # the three projections are lane slices of the f32 result.
    x = x_ref[...].astype(jnp.bfloat16)
    y = jnp.dot(x, wt_ref[...], preferred_element_type=jnp.float32) + b_ref[...]
    oq_ref[...] = y[:, :d_model].astype(oq_ref.dtype)
    ok_ref[...] = y[:, d_model:2 * d_model].astype(ok_ref.dtype)
    ov_ref[...] = y[:, 2 * d_model:].astype(ov_ref.dtype)


def _flash_attn_body(q_ref, k_ref, v_ref, mask_ref, o_ref, m_scr, l_scr, acc_scr,
                     *, n_heads, head_dim, scale):
    ki = pl.program_id(2)
    tq = acc_scr.shape[0]

    @pl.when(ki == 0)
    def _init():
        m_scr[...] = jnp.full_like(m_scr, -jnp.inf)
        l_scr[...] = jnp.zeros_like(l_scr)
        acc_scr[...] = jnp.zeros_like(acc_scr)

    # Fold 1/sqrt(h) into q (tq*D muls instead of tq*tk per head).
    q = (q_ref[0].astype(jnp.float32) * scale).astype(jnp.bfloat16)   # (tq, D)
    k = k_ref[0].astype(jnp.bfloat16)                                  # (tk, D)
    v = v_ref[0].astype(jnp.bfloat16)                                  # (tk, D)

    # Mask hoisted out of the head loop: one int8 compare -> additive f32 bias per
    # (q-tile, k-tile), reused by every head.
    bias = None
    if mask_ref is not None:
        bias = jnp.where(mask_ref[0] == 0, jnp.float32(-1e9), jnp.float32(0.0))

    # TODO(synk): when head_dim % 128 == 0 a per-head "parallel" grid axis would avoid
    # the sub-128-lane slices below and feed v7x's second TensorCore more work.
    for n in range(n_heads):                      # n_heads is small; static unroll
        lo, hi = n * head_dim, (n + 1) * head_dim
        s = jax.lax.dot_general(q[:, lo:hi], k[:, lo:hi],
                                (((1,), (1,)), ((), ())),
                                preferred_element_type=jnp.float32)    # (tq, tk)
        if bias is not None:
            s = s + bias
        m_prev = m_scr[n]                                              # (tq, 128) replicated
        m_new = jnp.maximum(m_prev, jnp.max(s, axis=-1, keepdims=True))
        alpha = jnp.exp(m_prev - m_new)                                # (tq, 128)
        p = jnp.exp(s - m_new[:, :1])                                  # (tq, tk)
        l_scr[n] = alpha * l_scr[n] + jnp.sum(p, axis=-1, keepdims=True)
        m_scr[n] = m_new
        acc_scr[:, lo:hi] = alpha[:, :1] * acc_scr[:, lo:hi] + jnp.dot(
            p.astype(jnp.bfloat16), v[:, lo:hi], preferred_element_type=jnp.float32)

    @pl.when(ki == pl.num_programs(2) - 1)
    def _finalize():
        inv = jnp.concatenate(
            [jnp.broadcast_to(pl.reciprocal(l_scr[n][:, :1], approx=True),
                              (tq, head_dim))
             for n in range(n_heads)], axis=-1)                        # (tq, D)
        # Single lane-dense (tq, D) store — heads merged without any XLA transpose.
        o_ref[0] = (acc_scr[...] * inv).astype(o_ref.dtype)


def _attn_kernel(q_ref, k_ref, v_ref, o_ref, m_scr, l_scr, acc_scr, **kw):
    _flash_attn_body(q_ref, k_ref, v_ref, None, o_ref, m_scr, l_scr, acc_scr, **kw)


def _attn_masked_kernel(q_ref, k_ref, v_ref, mask_ref, o_ref, m_scr, l_scr, acc_scr, **kw):
    _flash_attn_body(q_ref, k_ref, v_ref, mask_ref, o_ref, m_scr, l_scr, acc_scr, **kw)


# ------------------------------ kernel wrappers -----------------------------


def linear(x, wt_bf16, bias, out_dtype=None):
    """y = x @ wt + bias; wt pre-transposed (D_in, D_out) and pre-cast to bf16."""
    d_in = x.shape[-1]
    d_out = wt_bf16.shape[1]
    lead = x.shape[:-1]
    m = math.prod(lead)
    out_dtype = out_dtype or x.dtype
    vmem = _vmem_limit_bytes()
    x2 = x.reshape(m, d_in)
    tm = _pick_row_tile(m, vmem)
    tn = _pick_col_tile(d_in, d_out, vmem)
    w_invariant = (tn == d_out)
    out = pl.pallas_call(
        _linear_kernel,
        out_shape=jax.ShapeDtypeStruct((m, d_out), out_dtype),
        grid_spec=pltpu.PrefetchScalarGridSpec(
            num_scalar_prefetch=0,
            grid=(pl.cdiv(m, tm), pl.cdiv(d_out, tn)),
            in_specs=[
                pl.BlockSpec((tm, d_in), lambda i, j: (i, 0)),
                _weight_spec((d_in, tn), lambda i, j: (0, j),
                             d_in * tn * 2, grid_invariant=w_invariant),
                _weight_spec((1, tn), lambda i, j: (0, j),
                             4 * tn, grid_invariant=w_invariant),
            ],
            out_specs=pl.BlockSpec((tm, tn), lambda i, j: (i, j)),
        ),
        compiler_params=_mosaic_params(("parallel", "parallel")),
    )(x2, wt_bf16, bias.reshape(1, d_out))
    return out.reshape(lead + (d_out,))


def qkv_projection_fused(x, wqkv_bf16, b_qkv, out_dtype):
    """Fused self-attention Q/K/V projection: x read once, one (D, 3D) matmul."""
    b, s, d = x.shape
    m = b * s
    vmem = _vmem_limit_bytes()
    x2 = x.reshape(m, d)
    tm = _pick_row_tile(m, vmem)
    o_spec = pl.BlockSpec((tm, d), lambda i: (i, 0))
    q_p, k_p, v_p = pl.pallas_call(
        functools.partial(_qkv_fused_kernel, d_model=d),
        out_shape=tuple(jax.ShapeDtypeStruct((m, d), out_dtype) for _ in range(3)),
        grid_spec=pltpu.PrefetchScalarGridSpec(
            num_scalar_prefetch=0,
            grid=(pl.cdiv(m, tm),),
            in_specs=[
                pl.BlockSpec((tm, d), lambda i: (i, 0)),
                _weight_spec((d, 3 * d), lambda i: (0, 0),
                             d * 3 * d * 2, grid_invariant=True),
                _weight_spec((1, 3 * d), lambda i: (0, 0),
                             4 * 3 * d, grid_invariant=True),
            ],
            out_specs=[o_spec, o_spec, o_spec],
        ),
        compiler_params=_mosaic_params(("parallel",)),
    )(x2, wqkv_bf16, b_qkv.reshape(1, 3 * d))
    return q_p.reshape(b, s, d), k_p.reshape(b, s, d), v_p.reshape(b, s, d)


def attention_core(qp, kp, vp, n_heads, mask=None):
    """Flash-style multi-head attention on (B, S, D) activations (heads fused in-kernel)."""
    b, s_q, d = qp.shape
    s_k = kp.shape[1]
    h = d // n_heads
    scale = 1.0 / math.sqrt(h)
    vmem = _vmem_limit_bytes()
    tq, tk = _attn_seq_tiles(s_q, s_k, d, n_heads, vmem)
    grid = (b, s_q // tq, s_k // tk)

    # TODO(synk): on v5e, when S_k*D*2B fits comfortably, a per-batch-resident K/V
    # block (index map ignoring qi/ki, in-kernel k loop) would cut K/V re-streaming.
    in_specs = [
        pl.BlockSpec((1, tq, d), lambda bi, qi, ki: (bi, qi, 0)),
        pl.BlockSpec((1, tk, d), lambda bi, qi, ki: (bi, ki, 0)),
        pl.BlockSpec((1, tk, d), lambda bi, qi, ki: (bi, ki, 0)),
    ]
    args = [qp, kp, vp]
    kw = dict(n_heads=n_heads, head_dim=h, scale=scale)
    if mask is None:
        kernel = functools.partial(_attn_kernel, **kw)
    else:
        s_m = mask.shape[1]   # 1 (key-padding mask) or s_q (full attention mask)
        if s_m == 1:
            in_specs.append(pl.BlockSpec((1, 1, tk), lambda bi, qi, ki: (bi, 0, ki)))
        else:
            in_specs.append(pl.BlockSpec((1, tq, tk), lambda bi, qi, ki: (bi, qi, ki)))
        args.append(mask)
        kernel = functools.partial(_attn_masked_kernel, **kw)

    return pl.pallas_call(
        kernel,
        out_shape=jax.ShapeDtypeStruct((b, s_q, d), qp.dtype),
        grid_spec=pltpu.PrefetchScalarGridSpec(
            num_scalar_prefetch=0,
            grid=grid,
            in_specs=in_specs,
            out_specs=pl.BlockSpec((1, tq, d), lambda bi, qi, ki: (bi, qi, 0)),
            scratch_shapes=[
                pltpu.VMEM((n_heads, tq, 128), jnp.float32),  # running max (lane-dense)
                pltpu.VMEM((n_heads, tq, 128), jnp.float32),  # running denom (lane-dense)
                pltpu.VMEM((tq, d), jnp.float32),             # f32 ctx acc, all heads
            ],
        ),
        compiler_params=_mosaic_params(("parallel", "parallel", "arbitrary")),
    )(*args)


# --------------------------- module-level forward ---------------------------


def _normalize_mask(mask):
    """torch-style mask -> un-broadcast (B, {1|Sq}, Sk) int8, shared by all heads."""
    if mask is None:
        return None
    if mask.ndim == 2:                       # (b, s_k): key-padding mask
        m = mask[:, None, :]
    elif mask.ndim == 3:                     # (b, s_q, s_k)
        m = mask
    elif mask.ndim == 4:                     # (b, 1, s_q, s_k)
        if mask.shape[1] != 1:
            # TODO(synk): per-head (b, n, s_q, s_k) masks would need a head-indexed
            # mask BlockSpec; the module contract only covers a broadcast head dim.
            raise ValueError("Per-head masks are not supported")
        m = mask[:, 0]
    else:
        raise ValueError("Mask must be (b, s_k), (b, s_q, s_k) or (b, 1, s_q, s_k)")
    return (m != 0).astype(jnp.int8)


def init_mha_params(key, d_model):
    """xavier_uniform weights (stored pre-transposed as (D_in, D_out)), zero biases."""
    bound = math.sqrt(6.0 / (d_model + d_model))
    kq, kk, kv, ko = jax.random.split(key, 4)

    def w(k):
        return jax.random.uniform(k, (d_model, d_model), jnp.float32, -bound, bound)

    return {
        "w_qkv_t": jnp.concatenate([w(kq), w(kk), w(kv)], axis=1),   # (D, 3D)
        "b_qkv": jnp.zeros((3 * d_model,), jnp.float32),
        "w_o_t": w(ko),                                              # (D, D)
        "b_o": jnp.zeros((d_model,), jnp.float32),
    }


def multi_head_attention(params, q, k, v, n_heads, mask=None):
    b, s_q, d = q.shape
    h = d // n_heads
    assert n_heads * h == d, f"d_model ({d}) must be divisible by n_heads ({n_heads})"

    # dtype policy: bf16 into the MXU / between kernels, f32 accumulators in-kernel,
    # final output in the input dtype.
    act_dtype = jnp.bfloat16
    w_qkv_bf = params["w_qkv_t"].astype(jnp.bfloat16)

    fused_self = (q is k) and (k is v) and (3 * d * d * 2 <= _vmem_limit_bytes() // 3)
    if fused_self:
        q_p, k_p, v_p = qkv_projection_fused(q, w_qkv_bf, params["b_qkv"], act_dtype)
    else:
        q_p = linear(q, w_qkv_bf[:, :d], params["b_qkv"][:d], act_dtype)
        k_p = linear(k, w_qkv_bf[:, d:2 * d], params["b_qkv"][d:2 * d], act_dtype)
        v_p = linear(v, w_qkv_bf[:, 2 * d:], params["b_qkv"][2 * d:], act_dtype)

    ctx = attention_core(q_p, k_p, v_p, n_heads, _normalize_mask(mask))  # (b, s_q, d) bf16
    return linear(ctx, params["w_o_t"].astype(jnp.bfloat16), params["b_o"], q.dtype)
    # TODO(synk): return_attention=True would require materializing the (b,n,s_q,s_k)
    # probabilities, which the flash-style kernel deliberately never forms.


# ------------------------------- pure-JAX ref --------------------------------


def ref_mha(params, q, k, v, n_heads, mask=None):
    b, s_q, d = q.shape
    s_k = k.shape[1]
    h = d // n_heads
    wqkv, bqkv = params["w_qkv_t"], params["b_qkv"]
    qp = (q @ wqkv[:, :d] + bqkv[:d]).reshape(b, s_q, n_heads, h).transpose(0, 2, 1, 3)
    kp = (k @ wqkv[:, d:2 * d] + bqkv[d:2 * d]).reshape(b, s_k, n_heads, h).transpose(0, 2, 1, 3)
    vp = (v @ wqkv[:, 2 * d:] + bqkv[2 * d:]).reshape(b, s_k, n_heads, h).transpose(0, 2, 1, 3)
    s = jnp.einsum("bnqh,bnkh->bnqk", qp, kp) / math.sqrt(h)
    if mask is not None:
        m = _normalize_mask(mask)                       # (b, {1|s_q}, s_k)
        s = jnp.where(m[:, None, :, :] == 0, -1e9, s)
    p = jax.nn.softmax(s, axis=-1)
    ctx = jnp.einsum("bnqk,bnkh->bnqh", p, vp).transpose(0, 2, 1, 3).reshape(b, s_q, d)
    return ctx @ params["w_o_t"] + params["b_o"]


# ----------------------------------- main ------------------------------------

if __name__ == "__main__":
    B, S, D_MODEL, N_HEADS = 2, 8, 32, 4

    key = jax.random.PRNGKey(0)
    kp_, kq_, kk_, kv_, km_ = jax.random.split(key, 5)
    params = init_mha_params(kp_, D_MODEL)

    q = jax.random.normal(kq_, (B, S, D_MODEL), jnp.float32)
    k = jax.random.normal(kk_, (B, S, D_MODEL), jnp.float32)
    v = jax.random.normal(kv_, (B, S, D_MODEL), jnp.float32)

    # --- cross-attention path (distinct q/k/v), unmasked ---
    out = jax.block_until_ready(multi_head_attention(params, q, k, v, N_HEADS))
    ref = ref_mha(params, q, k, v, N_HEADS)
    assert out.shape == (B, S, D_MODEL)
    # bf16 MXU inputs + bf16 inter-kernel activations vs the f32 reference
    assert jnp.allclose(out, ref, atol=7e-2, rtol=7e-2), (
        f"unmasked mismatch, max abs diff {jnp.max(jnp.abs(out - ref))}")

    # --- self-attention path (fused QKV, same tensor) with a 2D key-padding mask ---
    mask2d = jax.random.bernoulli(km_, 0.7, (B, S)).astype(jnp.float32)
    mask2d = mask2d.at[:, 0].set(1.0)  # keep at least one valid key per batch
    out_s = jax.block_until_ready(
        multi_head_attention(params, q, q, q, N_HEADS, mask=mask2d))
    ref_s = ref_mha(params, q, q, q, N_HEADS, mask=mask2d)
    assert jnp.allclose(out_s, ref_s, atol=7e-2, rtol=7e-2), (
        f"masked self-attn mismatch, max abs diff {jnp.max(jnp.abs(out_s - ref_s))}")

    print("KERNEL_OK")
</pallas_src>

<mosaic_0001>
module attributes {stable_mosaic.version = 11 : i64} {
  func.func @_linear_kernel(%arg0: i32, %arg1: i32, %arg2: memref<16x32xf32, #tpu.memory_space<vmem>>, %arg3: memref<32x32xbf16, #tpu.memory_space<vmem>>, %arg4: memref<1x32xf32, #tpu.memory_space<vmem>>, %arg5: memref<16x32xbf16, #tpu.memory_space<vmem>>) attributes {dimension_semantics = [#tpu.dimension_semantics<parallel>, #tpu.dimension_semantics<parallel>], iteration_bounds = array<i64: 1, 1>, scalar_prefetch = 0 : i64, scratch_operands = 0 : i64, tpu.core_type = #tpu.core_type<tc>, window_params = [{transform_indices = @transform_0, window_bounds = array<i64: 16, 32>}, {transform_indices = @transform_1, window_bounds = array<i64: 32, 32>}, {transform_indices = @transform_2, window_bounds = array<i64: 1, 32>}, {transform_indices = @transform_3, window_bounds = array<i64: 16, 32>}]} {
    %c0 = arith.constant 0 : index
    %c0_0 = arith.constant 0 : index
    %0 = vector.load %arg2[%c0, %c0_0] : memref<16x32xf32, #tpu.memory_space<vmem>>, vector<16x32xf32>
    %1 = arith.truncf %0 : vector<16x32xf32> to vector<16x32xbf16>
    %c0_1 = arith.constant 0 : index
    %c0_2 = arith.constant 0 : index
    %2 = vector.load %arg3[%c0_1, %c0_2] : memref<32x32xbf16, #tpu.memory_space<vmem>>, vector<32x32xbf16>
    %cst = arith.constant dense<0.000000e+00> : vector<16x32xf32>
    %3 = tpu.matmul %1, %2, %cst {dimension_numbers = #tpu.dot_dimension_numbers<[1], [0], [0], [1], [0, 0, 1, 1], [], []>} : vector<16x32xbf16>, vector<32x32xbf16>, vector<16x32xf32> -> vector<16x32xf32>
    %c0_3 = arith.constant 0 : index
    %c0_4 = arith.constant 0 : index
    %4 = vector.load %arg4[%c0_3, %c0_4] : memref<1x32xf32, #tpu.memory_space<vmem>>, vector<1x32xf32>
    %5 = vector.broadcast %4 : vector<1x32xf32> to vector<16x32xf32>
    %6 = arith.addf %3, %5 : vector<16x32xf32>
    %7 = arith.truncf %6 : vector<16x32xf32> to vector<16x32xbf16>
    %c0_5 = arith.constant 0 : index
    %c0_6 = arith.constant 0 : index
    %8 = vector.load %arg5[%c0_5, %c0_6] : memref<16x32xbf16, #tpu.memory_space<vmem>>, vector<16x32xbf16>
    tpu.vector_store %arg5[%c0_5, %c0_6], %7 {strides = array<i32>} : memref<16x32xbf16, #tpu.memory_space<vmem>>, vector<16x32xbf16>,
    return
  }
  func.func @transform_0(%arg0: i32, %arg1: i32) -> (i32, i32) {
    %c0_i32 = arith.constant 0 : i32
    %c0_i32_0 = arith.constant 0 : i32
    return %arg0, %c0_i32 : i32, i32
  }
  func.func @transform_1(%arg0: i32, %arg1: i32) -> (i32, i32) {
    %c0_i32 = arith.constant 0 : i32
    %c0_i32_0 = arith.constant 0 : i32
    return %c0_i32, %arg1 : i32, i32
  }
  func.func @transform_2(%arg0: i32, %arg1: i32) -> (i32, i32) {
    %c0_i32 = arith.constant 0 : i32
    %c0_i32_0 = arith.constant 0 : i32
    return %c0_i32, %arg1 : i32, i32
  }
  func.func @transform_3(%arg0: i32, %arg1: i32) -> (i32, i32) {
    %c0_i32 = arith.constant 0 : i32
    return %arg0, %arg1 : i32, i32
  }
}

</mosaic_0001>

<bundles_post_ra>
// kernel: tpu_custom_call.1
= control target key start
LH: loop header
LB: loop body
LE: loop exit
PB: predicated region body
PF: predicated region fallthrough
CT: control target
= control target key end

     0   :  { %8 = vsyncpa [#allocation3], 0  ;;  %s364_s0 = inlined_call_operand.hbm [shape: f32[16,32], index: 0, kind: input, shape index: {}]   ;;  %s365_s1 = inlined_call_operand.hbm [shape: bf16[32,32], index: 1, kind: input, shape index: {}]   ;;  %s366_s2 = inlined_call_operand.hbm [shape: f32[1,32], index: 2, kind: input, shape index: {}]   ;;  %s367_s3 = inlined_call_operand.hbm [shape: bf16[16,32], index: 3, kind: output, shape index: {}]  }
   0x1   :  { %9 = vsyncpa [#allocation6], 0 }
   0x2   :  { %10 = vsyncpa [#allocation4], 0  ;;  %s280_s12 = smov [#allocation5]   ;;  %s186_s16 = scalar_lea.hbm %s365_s1, 256 }
   0x3   :  { %s28_s13 = sshll.u32 %s280_s12, 4  ;;  %p187_p0 = scmp.ne.s32.totalorder %s365_s1, %s186_s16  ;;  %s29_s13 = int_to_ptr.vmem [resolvable:$true] %s28_s13 }
   0x4   :  { %p190_p1 = scmp.lt.u32.totalorder %s186_s16, %s365_s1 }
   0x6   :  { %p192_p2 = pnand %p190_p1, %p187_p0 }
   0x8   :  { %195 = shalt.err (!%p192_p2)
}
   0x9   :  { %s196_s21 = scalar_lea.vmem %s29_s13, 256  ;;  %p201_p4 = scmp.lt.s32.totalorder %s29_s13, %s29_s13 }
   0xa   :  { %p197_p3 = scmp.ne.s32.totalorder %s29_s13, %s196_s21  ;;  %p202_p5 = scmp.lt.s32.totalorder %s196_s21, %s196_s21 }
   0xc   :  { %p203_p6 = por %p202_p5, %p201_p4 }
   0xe   :  { %p204_p7 = pnand %p203_p6, %p197_p3 }
  0x10   :  { %207 = shalt.err (!%p204_p7)
}
  0x11   :  { %s281_s22 = smov 64   ;;  %s282_s23 = smov 4  }
  0x12   :  { %34 = dma.hbm_to_vmem [thread:$0]  %s365_s1, 256, %s29_s13, [#allocation6], %s281_s22, %s281_s22, %s282_s23  }
  0x13   :  { %s283_s26 = smov [#allocation2]   ;;  %s208_s30 = scalar_lea.hbm %s364_s0, 256 }
  0x14   :  { %s16_s27 = sshll.u32 %s283_s26, 4  ;;  %p209_p8 = scmp.ne.s32.totalorder %s364_s0, %s208_s30  ;;  %s17_s27 = int_to_ptr.vmem [resolvable:$true] %s16_s27 }
  0x15   :  { %p212_p9 = scmp.lt.u32.totalorder %s208_s30, %s364_s0 }
  0x17   :  { %p214_p10 = pnand %p212_p9, %p209_p8 }
  0x19   :  { %217 = shalt.err (!%p214_p10)
}
  0x1a   :  { %s218_s8 = scalar_lea.vmem %s17_s27, 256  ;;  %p223_p12 = scmp.lt.s32.totalorder %s17_s27, %s17_s27 }
  0x1b   :  { %p219_p11 = scmp.ne.s32.totalorder %s17_s27, %s218_s8  ;;  %p224_p13 = scmp.lt.s32.totalorder %s218_s8, %s218_s8 }
  0x1d   :  { %p225_p0 = por %p224_p13, %p223_p12 }
  0x1f   :  { %p226_p1 = pnand %p225_p0, %p219_p11 }
  0x21   :  { %229 = shalt.err (!%p226_p1)
}
  0x22   :  { %s284_s1 = smov 128   ;;  %s285_s9 = smov 8  }
  0x23   :  { %22 = dma.hbm_to_vmem [thread:$0]  %s364_s0, 256, %s17_s27, [#allocation3], %s284_s1, %s284_s1, %s285_s9  }
  0x24   :  { %s286_s12 = smov [#allocation7]   ;;  %s230_s16 = scalar_lea.hbm %s366_s2, 16 }
  0x25   :  { %s41_s13 = sshll.u32 %s286_s12, 4  ;;  %p231_p2 = scmp.ne.s32.totalorder %s366_s2, %s230_s16  ;;  %s42_s13 = int_to_ptr.vmem [resolvable:$true] %s41_s13 }
  0x26   :  { %p234_p3 = scmp.lt.u32.totalorder %s230_s16, %s366_s2 }
  0x28   :  { %p236_p4 = pnand %p234_p3, %p231_p2 }
  0x2a   :  { %239 = shalt.err (!%p236_p4)
}
  0x2b   :  { %s240_s21 = scalar_lea.vmem %s42_s13, 16  ;;  %s244_s0 = scalar_lea.vmem %s42_s13, 32 }
  0x2c   :  { %p241_p5 = scmp.ne.s32.totalorder %s42_s13, %s240_s21  ;;  %p245_p6 = scmp.lt.s32.totalorder %s42_s13, %s42_s13 }
  0x2d   :  { %p246_p7 = scmp.lt.s32.totalorder %s244_s0, %s240_s21 }
  0x2f   :  { %p247_p8 = por %p246_p7, %p245_p6 }
  0x31   :  { %p248_p9 = pnand %p247_p8, %p241_p5 }
  0x33   :  { %251 = shalt.err (!%p248_p9)
}
  0x34   :  { %44 = dma.hbm_to_vmem [thread:$0]  %s366_s2, 16, %s42_s13, [#allocation6]  }
  0x35   :  { %274 = dma.done.wait [#allocation3], 256  }
  0x36   :  { %275 = vsyncadd [#allocation3], 4294967040 }
  0x37   :  { %276 = dma.done.wait [#allocation6], 272  }
  0x38   :  { %277 = vsyncadd [#allocation6], 4294967024  ;;  %v287_v0 = vmov 0.0   ;;  %vm288_vm0 = vmmov 0   ;;  %v184_v1 = vld [vmem:[#allocation5] sm:$0xff]   ;;  %v185_v2 = vld [vmem:[#allocation5 + $0x8] sm:$0xff]  }
  0x39   :  { %166 = vmatprep.subr.bf16.mxu0 %v287_v0  ;;  %170 = vmatprep.mubr.msk.bf16.mxu0 %vm288_vm0, %v287_v0  ;;  %v55_v3 = vld [vmem:[#allocation2] sm:$0xff]  ;;  %v56_v4 = vld [vmem:[#allocation2 + $0x8] sm:$0xff]  ;;  %vm81_vm1 = vcmask 261120   ;;  %vm134_vm2 = vcmask 257024   ;;  %s289_s2 = smov [#allocation8]  }
  0x3a   :  { %167 = vmatpush3.bf16.msra.mxu0 %v184_v1  ;;  %v57_v5 = vpack.c.bf16 %v56_v4, %v55_v3  ;;  %v155_v6 = vld [vmem:[#allocation7] ss:$0 sm:$0xff]  ;;  %s142_s26 = sshll.u32 %s289_s2, 4  ;;  %s143_s26 = int_to_ptr.vmem [resolvable:$true] %s142_s26 }
  0x3b   :  { %168 = vmatprep.subr.bf16.mxu0 %v287_v0  ;;  %s252_s27 = scalar_lea.vmem %s143_s26, 128  ;;  %p257_p11 = scmp.lt.s32.totalorder %s143_s26, %s143_s26 }
  0x3c   :  { %p253_p10 = scmp.ne.s32.totalorder %s143_s26, %s252_s27  ;;  %p258_p12 = scmp.lt.s32.totalorder %s252_s27, %s252_s27 }
  0x3e   :  { %169 = vmatpush3.bf16.msra.mxu0 %v185_v2  ;;  %p259_p13 = por %p258_p12, %p257_p11 }
  0x40   :  { %p260_p0 = pnand %p259_p13, %p253_p10 }
  0x41   :  { %171 = vmatmul.mubr.msk.bf16.vlgmr.msra.gmra.mrb[0].mxu0 %vm81_vm1, %v57_v5 }
 0x114   :  { %v119_v7 = vpop.f32.mrb[0].mxu0 }
 0x115   :  { %v120_v8 = vadd.f32 %v155_v6, %v119_v7  ;;  %v172_v9 = vpop.f32.mrb[1].mxu0 }
 0x116   :  { %v122_v10 = vpop.f32.mrb[2].mxu0 }
 0x117   :  { %v161_v11 = vpack.c.bf16 %v120_v8, %v120_v8  ;;  %v123_v12 = vadd.f32 %v155_v6, %v122_v10  ;;  %v173_v13 = vpop.f32.mrb[3].mxu0 }
 0x119   :  { %v162_v14 = vpack.c.bf16 %v123_v12, %v123_v12  ;;  %135 = vst.msk [vmem:[#allocation8] sm:$0xf] %vm134_vm2, %v161_v11 }
 0x11b   :  { %136 = vst.msk [vmem:[#allocation8 + $0x4] sm:$0xf] %vm134_vm2, %v162_v14 }
 0x11c   :  { %263 = shalt.err (!%p260_p0)
}
 0x11d   :  { %s264_s30 = scalar_lea.hbm %s367_s3, 128 }
 0x11e   :  { %p265_p1 = scmp.ne.s32.totalorder %s367_s3, %s264_s30  ;;  %p268_p2 = scmp.lt.u32.totalorder %s264_s30, %s367_s3 }
 0x120   :  { %p270_p3 = pnand %p268_p2, %p265_p1 }
 0x122   :  { %273 = shalt.err (!%p270_p3)
}
 0x123   :  { %148 = dma.vmem_to_hbm [thread:$0]  %s143_s26, 128, %s367_s3, [#allocation4], %s281_s22, %s281_s22, %s282_s23  }
 0x124   :  { %278 = dma.done.wait [#allocation4], 128  }
 0x125   :  { %279 = vsyncadd [#allocation4], 4294967168 }
 0x126   :  { %152 = vsyncpa [#allocation3], 1 }
 0x127   :  { %153 = vsyncpa [#allocation6], 1 }
 0x128   :  { %154 = vsyncpa [#allocation4], 1 }

</bundles_post_ra>
